<compile_context>
chip_gen: v6e
topology: v6e:2x2x1
jax: 0.10.0
libtpu: 0.0.40
codegen_flags: <defaults>
</compile_context>

<pallas_src>
import math

import jax
import jax.numpy as jnp
from jax.experimental import pallas as pl
from jax.experimental.pallas import tpu as pltpu


def _domain_adv_kernel(x_ref, w1_ref, b1_ref, w2_ref, b2_ref, o_ref):
    # First linear + ReLU (MXU matmul, f32 accumulation).
    h = jnp.dot(x_ref[...], w1_ref[...], preferred_element_type=jnp.float32)
    h = jnp.maximum(h + b1_ref[...], 0.0)                     # (B, H) + (1, H)

    # Second linear (output dim 1) as VPU multiply + XLU lane reduction
    # instead of an N=1 MXU matmul.
    logit = jnp.sum(h * w2_ref[...], axis=-1, keepdims=True)  # (B, 1)
    logit = logit + b2_ref[0]                                 # scalar bias from SMEM

    o_ref[...] = jax.nn.sigmoid(logit).astype(o_ref.dtype)


def domain_adversarial_forward(x, w1, b1, w2_row, b2, current_epoch, total_epochs,
                               *, batch_tile=256, use_bf16=False):
    """Pallas forward pass of DomainAdversarialLayer.

    x      : (B, F) float32
    w1     : (F, H), b1: (1, H)
    w2_row : (1, H), b2: (1,)
    returns: (B, 1) float32
    """
    # alpha schedule — matches the PyTorch module; the gradient-reversal op is
    # identity in the forward pass, so alpha does not influence this kernel.
    alpha = 2.0 * (current_epoch / total_epochs) - 1.0
    alpha = math.exp(-10.0 * alpha)
    alpha = 2.0 / (1.0 + alpha) - 1.0
    del alpha  # only used in backward of GradientReversal

    B, F = x.shape
    H = w1.shape[1]

    # Optional bf16 operands for the MXU matmul (f32 accumulation preserved via
    # preferred_element_type). Biases / w2 / sigmoid stay in f32.
    compute_dtype = jnp.bfloat16 if use_bf16 else x.dtype
    x_c = x.astype(compute_dtype)
    w1_c = w1.astype(compute_dtype)

    if B <= batch_tile:
        # --- small batch: gridless call (no 1-step grid loop/DMA bookkeeping) ---
        return pl.pallas_call(
            _domain_adv_kernel,
            out_shape=jax.ShapeDtypeStruct((B, 1), jnp.float32),
            in_specs=[
                pl.BlockSpec(memory_space=pltpu.MemorySpace.VMEM),   # x
                pl.BlockSpec(memory_space=pltpu.MemorySpace.VMEM),   # w1
                pl.BlockSpec(memory_space=pltpu.MemorySpace.VMEM),   # b1
                pl.BlockSpec(memory_space=pltpu.MemorySpace.VMEM),   # w2 row
                pl.BlockSpec(memory_space=pltpu.MemorySpace.SMEM),   # b2 scalar
            ],
            out_specs=pl.BlockSpec(memory_space=pltpu.MemorySpace.VMEM),
        )(x_c, w1_c, b1, w2_row, b2)

    # --- large batch: tile B over a "parallel" grid (megacore / v7x 2-TC). ---
    # Weights use constant index_maps -> single resident VMEM copy, no re-DMA
    # per step. (Note for v7x: 64 MiB VMEM — for much larger F/H also cast W1
    # to bf16 or add a K-tiled axis; at these sizes W1 is tiny.)
    TM = batch_tile
    n_tiles = pl.cdiv(B, TM)
    B_pad = n_tiles * TM
    if B_pad != B:
        x_c = jnp.pad(x_c, ((0, B_pad - B), (0, 0)))

    out = pl.pallas_call(
        _domain_adv_kernel,
        out_shape=jax.ShapeDtypeStruct((B_pad, 1), jnp.float32),
        grid=(n_tiles,),
        in_specs=[
            pl.BlockSpec((TM, F), lambda i: (i, 0)),                 # x tile
            pl.BlockSpec((F, H), lambda i: (0, 0)),                  # w1 (resident)
            pl.BlockSpec((1, H), lambda i: (0, 0)),                  # b1 (resident)
            pl.BlockSpec((1, H), lambda i: (0, 0)),                  # w2 row (resident)
            pl.BlockSpec(memory_space=pltpu.MemorySpace.SMEM),       # b2 scalar
        ],
        out_specs=pl.BlockSpec((TM, 1), lambda i: (i, 0)),
        compiler_params=pltpu.CompilerParams(
            dimension_semantics=("parallel",)),
    )(x_c, w1_c, b1, w2_row, b2)
    return out[:B]


def _init_params(key, input_features, hidden_size):
    """Deterministic init mimicking nn.Linear's U(-1/sqrt(fan_in), 1/sqrt(fan_in))."""
    k1, k2, k3, k4 = jax.random.split(key, 4)
    lim1 = 1.0 / math.sqrt(input_features)
    lim2 = 1.0 / math.sqrt(hidden_size)
    w1 = jax.random.uniform(k1, (input_features, hidden_size),
                            minval=-lim1, maxval=lim1, dtype=jnp.float32)
    b1 = jax.random.uniform(k2, (1, hidden_size),
                            minval=-lim1, maxval=lim1, dtype=jnp.float32)
    w2_row = jax.random.uniform(k3, (1, hidden_size),
                                minval=-lim2, maxval=lim2, dtype=jnp.float32)
    b2 = jax.random.uniform(k4, (1,),
                            minval=-lim2, maxval=lim2, dtype=jnp.float32)
    return w1, b1, w2_row, b2


def _reference(x, w1, b1, w2_row, b2):
    h = jnp.maximum(x @ w1 + b1, 0.0)
    return jax.nn.sigmoid(jnp.sum(h * w2_row, axis=-1, keepdims=True) + b2[0])


if __name__ == "__main__":
    key = jax.random.PRNGKey(0)
    kx, kp, kx2 = jax.random.split(key, 3)

    input_features = 32   # F
    hidden_size = 256     # module default H
    w1, b1, w2_row, b2 = _init_params(kp, input_features, hidden_size)

    # --- small batch: gridless f32 path ---
    B = 8
    x = jax.random.normal(kx, (B, input_features), dtype=jnp.float32)
    out = domain_adversarial_forward(x, w1, b1, w2_row, b2,
                                     current_epoch=3, total_epochs=10)
    out = jax.block_until_ready(out)
    ref = _reference(x, w1, b1, w2_row, b2)
    assert out.shape == (B, 1)
    assert jnp.allclose(out, ref, atol=1e-5, rtol=1e-5)

    # --- larger batch: batch-tiled "parallel"-grid path with bf16 MXU operands ---
    B2 = 512
    x2 = jax.random.normal(kx2, (B2, input_features), dtype=jnp.float32)
    out2 = domain_adversarial_forward(x2, w1, b1, w2_row, b2,
                                      current_epoch=3, total_epochs=10,
                                      batch_tile=256, use_bf16=True)
    out2 = jax.block_until_ready(out2)
    # Reference with the same bf16 input rounding (accumulation in f32).
    x2b = x2.astype(jnp.bfloat16).astype(jnp.float32)
    w1b = w1.astype(jnp.bfloat16).astype(jnp.float32)
    ref2 = _reference(x2b, w1b, b1, w2_row, b2)
    assert out2.shape == (B2, 1)
    assert jnp.allclose(out2, ref2, atol=1e-3, rtol=1e-3)

    print("KERNEL_OK")
</pallas_src>

<mosaic_0001>
module attributes {stable_mosaic.version = 11 : i64} {
  func.func @_domain_adv_kernel(%arg0: memref<8x32xf32, #tpu.memory_space<vmem>>, %arg1: memref<32x256xf32, #tpu.memory_space<vmem>>, %arg2: memref<1x256xf32, #tpu.memory_space<vmem>>, %arg3: memref<1x256xf32, #tpu.memory_space<vmem>>, %arg4: memref<1xf32, #tpu.memory_space<smem>>, %arg5: memref<8x1xf32, #tpu.memory_space<vmem>>) attributes {dimension_semantics = [], scalar_prefetch = 0 : i64, scratch_operands = 0 : i64, tpu.core_type = #tpu.core_type<tc>} {
    %c0 = arith.constant 0 : index
    %c0_0 = arith.constant 0 : index
    %0 = vector.load %arg0[%c0, %c0_0] : memref<8x32xf32, #tpu.memory_space<vmem>>, vector<8x32xf32>
    %c0_1 = arith.constant 0 : index
    %c0_2 = arith.constant 0 : index
    %1 = vector.load %arg1[%c0_1, %c0_2] : memref<32x256xf32, #tpu.memory_space<vmem>>, vector<32x256xf32>
    %cst = arith.constant dense<0.000000e+00> : vector<8x256xf32>
    %2 = tpu.matmul %0, %1, %cst {dimension_numbers = #tpu.dot_dimension_numbers<[1], [0], [0], [1], [0, 0, 1, 1], [], []>} : vector<8x32xf32>, vector<32x256xf32>, vector<8x256xf32> -> vector<8x256xf32>
    %c0_3 = arith.constant 0 : index
    %c0_4 = arith.constant 0 : index
    %3 = vector.load %arg2[%c0_3, %c0_4] : memref<1x256xf32, #tpu.memory_space<vmem>>, vector<1x256xf32>
    %4 = vector.broadcast %3 : vector<1x256xf32> to vector<8x256xf32>
    %5 = arith.addf %2, %4 : vector<8x256xf32>
    %cst_5 = arith.constant 0.000000e+00 : f32
    %6 = vector.broadcast %cst_5 : f32 to vector<8x256xf32>
    %7 = arith.maximumf %5, %6 : vector<8x256xf32>
    %c0_6 = arith.constant 0 : index
    %c0_7 = arith.constant 0 : index
    %8 = vector.load %arg3[%c0_6, %c0_7] : memref<1x256xf32, #tpu.memory_space<vmem>>, vector<1x256xf32>
    %9 = vector.broadcast %8 : vector<1x256xf32> to vector<8x256xf32>
    %10 = arith.mulf %7, %9 : vector<8x256xf32>
    %cst_8 = arith.constant dense<0.000000e+00> : vector<8xf32>
    %11 = vector.multi_reduction <add>, %10, %cst_8 [1] : vector<8x256xf32> to vector<8xf32>
    %12 = vector.shape_cast %11 : vector<8xf32> to vector<8x1xf32>
    %c0_9 = arith.constant 0 : index
    %13 = memref.load %arg4[%c0_9] : memref<1xf32, #tpu.memory_space<smem>>
    %14 = vector.broadcast %13 : f32 to vector<8x1xf32>
    %15 = arith.addf %12, %14 : vector<8x1xf32>
    %16 = arith.negf %15 : vector<8x1xf32>
    %17 = math.exp %16 : vector<8x1xf32>
    %cst_10 = arith.constant 1.000000e+00 : f32
    %18 = vector.broadcast %cst_10 : f32 to vector<8x1xf32>
    %19 = arith.addf %18, %17 : vector<8x1xf32>
    %20 = arith.divf %18, %19 : vector<8x1xf32>
    %c0_11 = arith.constant 0 : index
    %c0_12 = arith.constant 0 : index
    %21 = vector.load %arg5[%c0_11, %c0_12] : memref<8x1xf32, #tpu.memory_space<vmem>>, vector<8x1xf32>
    tpu.vector_store %arg5[%c0_11, %c0_12], %20 {strides = array<i32>} : memref<8x1xf32, #tpu.memory_space<vmem>>, vector<8x1xf32>,
    return
  }
}

</mosaic_0001>

<bundles_post_ra>
// kernel: tpu_custom_call.1
= control target key start
LH: loop header
LB: loop body
LE: loop exit
PB: predicated region body
PF: predicated region fallthrough
CT: control target
= control target key end

     0   :  { %11 = vsyncpa [#allocation4], 0  ;;  %s287_s0 = inlined_call_operand.hbm [shape: f32[8,32], index: 0, kind: input, shape index: {}]   ;;  %s288_s1 = inlined_call_operand.hbm [shape: f32[32,256], index: 1, kind: input, shape index: {}]   ;;  %s289_s2 = inlined_call_operand.vmem [shape: f32[1,256], index: 2, kind: input, shape index: {}]   ;;  %s290_s3 = inlined_call_operand.vmem [shape: f32[1,256], index: 3, kind: input, shape index: {}]   ;;  %s291_s4 = inlined_call_operand.<no memory space> [shape: f32[1], index: 4, kind: input, shape index: {}]   ;;  %s292_s5 = inlined_call_operand.vmem [shape: f32[8,1], index: 5, kind: output, shape index: {}]  }
   0x1   :  { %12 = vsyncpa [#allocation6], 0  ;;  %s234_s18 = smov [#allocation3]   ;;  %s235_s20 = smov [#allocation5]  }
   0x2   :  { %s19_s19 = sshll.u32 %s234_s18, 4  ;;  %s28_s21 = sshll.u32 %s235_s20, 4  ;;  %s20_s19 = int_to_ptr.vmem [resolvable:$true] %s19_s19  ;;  %s29_s21 = int_to_ptr.vmem [resolvable:$true] %s28_s21 }
   0x3   :  { %s198_s22 = scalar_lea.vmem %s20_s19, 128  ;;  %p203_p1 = scmp.lt.s32.totalorder %s20_s19, %s20_s19 }
   0x4   :  { %p199_p0 = scmp.ne.s32.totalorder %s20_s19, %s198_s22  ;;  %p204_p2 = scmp.lt.s32.totalorder %s198_s22, %s198_s22 }
   0x6   :  { %p205_p3 = por %p204_p2, %p203_p1 }
   0x8   :  { %p206_p4 = pnand %p205_p3, %p199_p0 }
   0xa   :  { %209 = shalt.err (!%p206_p4)
}
   0xb   :  { %22 = dma.hbm_to_vmem [thread:$0]  %s287_s0, 128, %s20_s19, [#allocation4]  }
   0xc   :  { %s218_s25 = scalar_lea.vmem %s29_s21, 1024  ;;  %p223_p6 = scmp.lt.s32.totalorder %s29_s21, %s29_s21 }
   0xd   :  { %p219_p5 = scmp.ne.s32.totalorder %s29_s21, %s218_s25  ;;  %p224_p7 = scmp.lt.s32.totalorder %s218_s25, %s218_s25 }
   0xf   :  { %p225_p8 = por %p224_p7, %p223_p6 }
  0x11   :  { %p226_p9 = pnand %p225_p8, %p219_p5 }
  0x13   :  { %229 = shalt.err (!%p226_p9)
}
  0x14   :  { %s236_s26 = smov 256   ;;  %s237_s27 = smov 16  }
  0x15   :  { %34 = dma.hbm_to_vmem [thread:$0]  %s288_s1, 1024, %s29_s21, [#allocation6], %s236_s26, %s236_s26, %s237_s27  }
  0x16   :  { %230 = dma.done.wait [#allocation4], 128  }
  0x17   :  { %231 = vsyncadd [#allocation4], 4294967168 }
  0x18   :  { %232 = dma.done.wait [#allocation6], 1024  }
  0x19   :  { %233 = vsyncadd [#allocation6], 4294966272  ;;  %v238_v0 = vmov 0.0   ;;  %v55_v1 = vld [vmem:[#allocation5 + $0x38] sm:$0xff]  ;;  %v54_v2 = vld [vmem:[#allocation5 + $0x30] sm:$0xff]  ;;  %vm68_vm0 = vcmask 261120   ;;  %v58_v10 = vlaneseq  ;;  %v163_v29 = vstv %s291_s4 }
  0x1a   :  { %136 = vmatprep.mubr.f32.mxu0 %v238_v0  ;;  %v53_v3 = vld [vmem:[#allocation5 + $0x28] sm:$0xff]  ;;  %96 = vmatprep.subr.mxu0 %v55_v1  ;;  %v52_v4 = vld [vmem:[#allocation5 + $0x20] sm:$0xff]  ;;  %v51_v5 = vld [vmem:[#allocation5 + $0x18] sm:$0xff]  ;;  %vm171_vm1 = vcmask 7168  }
  0x1b   :  { %97 = vmatpush1.msra.mxu0 %v54_v2  ;;  %v50_v6 = vld [vmem:[#allocation5 + $0x10] sm:$0xff]  ;;  %v49_v7 = vld [vmem:[#allocation5 + $0x8] sm:$0xff]  ;;  %v48_v8 = vld [vmem:[#allocation5] sm:$0xff]  ;;  %v59_v11 = vshrl.u32 %v58_v10, 7 }
  0x1c   :  { %98 = vmatprep.subr.mxu0 %v53_v3  ;;  %v47_v9 = vld [vmem:[#allocation3] sm:$0xff] }
  0x1d   :  { %99 = vmatpush1.msra.mxu0 %v52_v4  ;;  %v60_v12 = vsub.s32 0, %v59_v11  ;;  %v56_v13 = vld [vmem:[%s289_s2] sm:$0x3]  ;;  %v64_v14 = vsub.s32 1, %v59_v11 }
  0x1e   :  { %100 = vmatprep.subr.mxu0 %v51_v5  ;;  %v145_v18 = vld [vmem:[%s290_s3] sm:$0x3] }
  0x1f   :  { %101 = vmatpush1.msra.mxu0 %v50_v6  ;;  %v61_v15 = vrot.slane %v56_v13, %v60_v12  ;;  %v65_v16 = vrot.slane %v56_v13, %v64_v14  ;;  %v150_v23 = vrot.slane %v145_v18, %v60_v12  ;;  %v154_v24 = vrot.slane %v145_v18, %v64_v14 }
  0x20   :  { %102 = vmatprep.subr.mxu0 %v49_v7 }
  0x21   :  { %103 = vmatpush1.msra.mxu0 %v48_v8 }
  0x22   :  { %179 = vmatmul.mubr.msk.f32.vlgmr.msra.gmra.mxu0 %vm68_vm0, %v47_v9 }
  0xe2   :  { %v138_v17 = vpop.f32.mrf.mxu0 }
  0xe3   :  { %v139_v19 = vadd.f32 %v138_v17, %v61_v15 }
  0xe4   :  { %v140_v20 = vpop.f32.mrf.mxu0 }
  0xe5   :  { %v143_v21 = vmax.f32 %v139_v19, 0.0  ;;  %v141_v22 = vadd.f32 %v140_v20, %v65_v16 }
  0xe7   :  { %v144_v25 = vmax.f32 %v141_v22, 0.0  ;;  %v157_v26 = vmul.f32 %v150_v23, %v143_v21 }
  0xe9   :  { %v158_v27 = vmul.f32 %v154_v24, %v144_v25 }
  0xeb   :  { %v159_v28 = vadd.f32 %v158_v27, %v157_v26 }
  0xed   :  { %160 = vadd.xlane.f32.xlu0 %v159_v28 }
 0x176   :  { %v161_v30 = vpop.xlane.xlu0 %160 }
 0x177   :  { %v164_v31 = vadd.f32 %v163_v29, %v161_v30 }
 0x179   :  { %v180_v32 = vmul.f32 -1.442695, %v164_v31 }
 0x17b   :  { %186 = vpow2.f32 %v180_v32 }
 0x188   :  { %v187_v33 = vpop.eup %186 }
 0x189   :  { %v168_v34 = vadd.f32 1.0, %v187_v33 }
 0x18b   :  { %188 = vrcp.f32 %v168_v34 }
 0x198   :  { %v189_v35 = vpop.eup %188 }
 0x199   :  { %172 = vst.msk [vmem:[%s292_s5] sm:$0xff] %vm171_vm1, %v189_v35 }
 0x19a   :  { %177 = vsyncpa [#allocation4], 1 }
 0x19b   :  { %178 = vsyncpa [#allocation6], 1 }

</bundles_post_ra>
